<compile_context>
chip_gen: v6e
topology: v6e:2x2x1
jax: 0.10.0
libtpu: 0.0.40
codegen_flags: <defaults>
</compile_context>

<pallas_src>
import jax
import jax.numpy as jnp
import numpy as np
from jax.experimental import pallas as pl
from jax.experimental.pallas import tpu as pltpu

_BIAS_ROWS = 8  # sublane-aligned block holding the three bias/diff rows


def _membership_mlp_kernel(x_ref, p_ref, o_ref):
    # Static layout of the packed parameter slab (all offsets are Python ints):
    #   rows [0, I)          : W1             (I, H)
    #   rows [I, I+H)        : W2             (H, H)
    #   rows [I+H, I+2H)     : Wo_diff block  (H, H)  lane 0 = wo[:,0]-wo[:,1]
    #   rows [I+2H, I+2H+8)  : bias block     (8, H)
    #       row +0 : b1, row +1 : b2, row +2 lane 0 : bo[0]-bo[1]
    I = x_ref.shape[1]
    H = p_ref.shape[1]
    r_w2 = I
    r_wod = I + H
    r_bias = I + 2 * H

    x = x_ref[...]

    # layer1 + ReLU  (MXU matmul with f32 accumulation; VPU max)
    h1 = jnp.dot(x, p_ref[0:r_w2, :], preferred_element_type=jnp.float32)
    h1 = jnp.maximum(h1 + p_ref[r_bias:r_bias + 1, :], 0.0)

    # layer2 + ReLU
    h2 = jnp.dot(h1, p_ref[r_w2:r_wod, :], preferred_element_type=jnp.float32)
    h2 = jnp.maximum(h2 + p_ref[r_bias + 1:r_bias + 2, :], 0.0)

    # Output layer for num_classes == 2:
    #   softmax([l0, l1])[0] == sigmoid(l0 - l1)
    # The Wo_diff block has the (l0 - l1) weight column in lane 0 and zeros
    # elsewhere, so only column 0 of d_full is meaningful.
    d_full = jnp.dot(h2, p_ref[r_wod:r_bias, :],
                     preferred_element_type=jnp.float32)
    bo_d = p_ref[r_bias + 2:r_bias + 3, :]                 # (1, H), lane 0 real
    d = (d_full + bo_d)[:, 0:1]                            # (B, 1) = l0 - l1
    # sigmoid via EUP exp + approximate reciprocal (separate VLIW slot).
    p0 = pl.reciprocal(1.0 + jnp.exp(-d), approx=True)     # (B, 1)

    B = o_ref.shape[0]
    col = jax.lax.broadcasted_iota(jnp.int32, (B, 2), 1)
    o_ref[...] = jnp.where(col == 0, p0, 1.0 - p0).astype(o_ref.dtype)


def _pack_params(w1, b1, w2, b2, wo, bo):
    """Pack all parameters into one (I + 2H + 8, H) f32 slab -> single DMA."""
    I, H = w1.shape
    wo_diff = (wo[:, 0] - wo[:, 1]).astype(jnp.float32).reshape(H, 1)
    wo_block = jnp.pad(wo_diff, ((0, 0), (0, H - 1)))      # (H, H), lane 0 real
    bias_block = jnp.zeros((_BIAS_ROWS, H), jnp.float32)
    bias_block = bias_block.at[0, :].set(b1.astype(jnp.float32))
    bias_block = bias_block.at[1, :].set(b2.astype(jnp.float32))
    bias_block = bias_block.at[2, 0].set((bo[0] - bo[1]).astype(jnp.float32))
    return jnp.concatenate(
        [w1.astype(jnp.float32), w2.astype(jnp.float32), wo_block, bias_block],
        axis=0)


@jax.jit
def membership_forward(x, w1, b1, w2, b2, wo, bo):
    """Fused forward pass of MembershipModel.

    x:  (B, input_size)        float32
    w1: (input_size, hidden)   b1: (hidden,)
    w2: (hidden, hidden)       b2: (hidden,)
    wo: (hidden, 2)            bo: (2,)
    returns: (B, 2) softmax probabilities, float32
    """
    if wo.shape[1] != 2:
        # TODO(synk): generic num_classes > 2 softmax path (module pins C = 2).
        raise ValueError("kernel specialised for num_classes == 2")
    B = x.shape[0]
    params = _pack_params(w1, b1, w2, b2, wo, bo)
    return pl.pallas_call(
        _membership_mlp_kernel,
        out_shape=jax.ShapeDtypeStruct((B, 2), jnp.float32),
        in_specs=[pl.BlockSpec(memory_space=pltpu.MemorySpace.VMEM)] * 2,
        out_specs=pl.BlockSpec(memory_space=pltpu.MemorySpace.VMEM),
    )(x.astype(jnp.float32), params)


def _reference_forward(x, w1, b1, w2, b2, wo, bo):
    h1 = jnp.maximum(
        jnp.dot(x, w1, precision=jax.lax.Precision.HIGHEST) + b1, 0.0)
    h2 = jnp.maximum(
        jnp.dot(h1, w2, precision=jax.lax.Precision.HIGHEST) + b2, 0.0)
    logits = jnp.dot(h2, wo, precision=jax.lax.Precision.HIGHEST) + bo
    return jax.nn.softmax(logits, axis=1)


if __name__ == "__main__":
    # Small deterministic shapes consistent with the module.
    batch = 8
    input_size = 32
    hidden_size = 32
    num_classes = 2

    key = jax.random.PRNGKey(0)
    kx, k1, kb1, k2, kb2, ko, kbo = jax.random.split(key, 7)

    x = jax.random.normal(kx, (batch, input_size), dtype=jnp.float32)
    w1 = jax.random.normal(k1, (input_size, hidden_size), jnp.float32) * 0.1
    b1 = jax.random.normal(kb1, (hidden_size,), jnp.float32) * 0.1
    w2 = jax.random.normal(k2, (hidden_size, hidden_size), jnp.float32) * 0.1
    b2 = jax.random.normal(kb2, (hidden_size,), jnp.float32) * 0.1
    wo = jax.random.normal(ko, (hidden_size, num_classes), jnp.float32) * 0.1
    bo = jax.random.normal(kbo, (num_classes,), jnp.float32) * 0.1

    out = membership_forward(x, w1, b1, w2, b2, wo, bo)
    out = jax.block_until_ready(out)

    ref = _reference_forward(x, w1, b1, w2, b2, wo, bo)
    ref = jax.block_until_ready(ref)

    assert out.shape == (batch, num_classes), out.shape
    # Rows of a softmax must sum to 1.
    np.testing.assert_allclose(np.asarray(out).sum(axis=1),
                               np.ones(batch), rtol=1e-5, atol=1e-5)
    # Tolerance covers default-precision MXU matmuls + approx reciprocal vs.
    # the HIGHEST-precision f32 reference.
    np.testing.assert_allclose(np.asarray(out), np.asarray(ref),
                               rtol=2e-3, atol=2e-3)

    print("KERNEL_OK")
</pallas_src>

<mosaic_0001>
module attributes {stable_mosaic.version = 11 : i64} {
  func.func @_membership_mlp_kernel(%arg0: memref<8x32xf32, #tpu.memory_space<vmem>>, %arg1: memref<104x32xf32, #tpu.memory_space<vmem>>, %arg2: memref<8x2xf32, #tpu.memory_space<vmem>>) attributes {dimension_semantics = [], scalar_prefetch = 0 : i64, scratch_operands = 0 : i64, tpu.core_type = #tpu.core_type<tc>} {
    %c0 = arith.constant 0 : index
    %c0_0 = arith.constant 0 : index
    %0 = vector.load %arg0[%c0, %c0_0] : memref<8x32xf32, #tpu.memory_space<vmem>>, vector<8x32xf32>
    %c0_1 = arith.constant 0 : index
    %c0_2 = arith.constant 0 : index
    %1 = vector.load %arg1[%c0_1, %c0_2] : memref<104x32xf32, #tpu.memory_space<vmem>>, vector<32x32xf32>
    %cst = arith.constant dense<0.000000e+00> : vector<8x32xf32>
    %2 = tpu.matmul %0, %1, %cst {dimension_numbers = #tpu.dot_dimension_numbers<[1], [0], [0], [1], [0, 0, 1, 1], [], []>} : vector<8x32xf32>, vector<32x32xf32>, vector<8x32xf32> -> vector<8x32xf32>
    %c96 = arith.constant 96 : index
    %c0_3 = arith.constant 0 : index
    %3 = vector.load %arg1[%c96, %c0_3] : memref<104x32xf32, #tpu.memory_space<vmem>>, vector<1x32xf32>
    %4 = vector.broadcast %3 : vector<1x32xf32> to vector<8x32xf32>
    %5 = arith.addf %2, %4 : vector<8x32xf32>
    %cst_4 = arith.constant 0.000000e+00 : f32
    %6 = vector.broadcast %cst_4 : f32 to vector<8x32xf32>
    %7 = arith.maximumf %5, %6 : vector<8x32xf32>
    %c32 = arith.constant 32 : index
    %c0_5 = arith.constant 0 : index
    %8 = vector.load %arg1[%c32, %c0_5] : memref<104x32xf32, #tpu.memory_space<vmem>>, vector<32x32xf32>
    %cst_6 = arith.constant dense<0.000000e+00> : vector<8x32xf32>
    %9 = tpu.matmul %7, %8, %cst_6 {dimension_numbers = #tpu.dot_dimension_numbers<[1], [0], [0], [1], [0, 0, 1, 1], [], []>} : vector<8x32xf32>, vector<32x32xf32>, vector<8x32xf32> -> vector<8x32xf32>
    %c97 = arith.constant 97 : index
    %c0_7 = arith.constant 0 : index
    %10 = vector.load %arg1[%c97, %c0_7] : memref<104x32xf32, #tpu.memory_space<vmem>>, vector<1x32xf32>
    %11 = vector.broadcast %10 : vector<1x32xf32> to vector<8x32xf32>
    %12 = arith.addf %9, %11 : vector<8x32xf32>
    %cst_8 = arith.constant 0.000000e+00 : f32
    %13 = vector.broadcast %cst_8 : f32 to vector<8x32xf32>
    %14 = arith.maximumf %12, %13 : vector<8x32xf32>
    %c64 = arith.constant 64 : index
    %c0_9 = arith.constant 0 : index
    %15 = vector.load %arg1[%c64, %c0_9] : memref<104x32xf32, #tpu.memory_space<vmem>>, vector<32x32xf32>
    %cst_10 = arith.constant dense<0.000000e+00> : vector<8x32xf32>
    %16 = tpu.matmul %14, %15, %cst_10 {dimension_numbers = #tpu.dot_dimension_numbers<[1], [0], [0], [1], [0, 0, 1, 1], [], []>} : vector<8x32xf32>, vector<32x32xf32>, vector<8x32xf32> -> vector<8x32xf32>
    %c98 = arith.constant 98 : index
    %c0_11 = arith.constant 0 : index
    %17 = vector.load %arg1[%c98, %c0_11] : memref<104x32xf32, #tpu.memory_space<vmem>>, vector<1x32xf32>
    %18 = vector.broadcast %17 : vector<1x32xf32> to vector<8x32xf32>
    %19 = arith.addf %16, %18 : vector<8x32xf32>
    %20 = vector.extract_strided_slice %19 {offsets = [0, 0], sizes = [8, 1], strides = [1, 1]} : vector<8x32xf32> to vector<8x1xf32>
    %cst_12 = arith.constant 0.000000e+00 : f32
    %21 = vector.broadcast %cst_12 : f32 to vector<8x1xf32>
    %22 = arith.subf %21, %20 : vector<8x1xf32>
    %23 = math.exp %22 : vector<8x1xf32>
    %cst_13 = arith.constant 1.000000e+00 : f32
    %24 = vector.broadcast %cst_13 : f32 to vector<8x1xf32>
    %25 = arith.addf %24, %23 : vector<8x1xf32>
    %26 = tpu.reciprocal %25 {approx = true} : vector<8x1xf32> -> vector<8x1xf32>
    %27 = tpu.iota {dimensions = array<i32: 1>} : vector<8x2xi32>
    %c0_i32 = arith.constant 0 : i32
    %28 = vector.broadcast %c0_i32 : i32 to vector<8x2xi32>
    %29 = arith.cmpi eq, %27, %28 : vector<8x2xi32>
    %cst_14 = arith.constant 1.000000e+00 : f32
    %30 = vector.broadcast %cst_14 : f32 to vector<8x1xf32>
    %31 = arith.subf %30, %26 : vector<8x1xf32>
    %32 = vector.shape_cast %26 : vector<8x1xf32> to vector<8x1xf32>
    %33 = vector.broadcast %32 : vector<8x1xf32> to vector<8x2xf32>
    %34 = vector.shape_cast %31 : vector<8x1xf32> to vector<8x1xf32>
    %35 = vector.broadcast %34 : vector<8x1xf32> to vector<8x2xf32>
    %36 = arith.select %29, %33, %35 : vector<8x2xi1>, vector<8x2xf32>
    %c0_15 = arith.constant 0 : index
    %c0_16 = arith.constant 0 : index
    %37 = vector.load %arg2[%c0_15, %c0_16] : memref<8x2xf32, #tpu.memory_space<vmem>>, vector<8x2xf32>
    tpu.vector_store %arg2[%c0_15, %c0_16], %36 {strides = array<i32>} : memref<8x2xf32, #tpu.memory_space<vmem>>, vector<8x2xf32>,
    return
  }
}

</mosaic_0001>

<bundles_post_ra>
// kernel: membership_forward.1
= control target key start
LH: loop header
LB: loop body
LE: loop exit
PB: predicated region body
PF: predicated region fallthrough
CT: control target
= control target key end

     0   :  { %v349_v0 = vmov 0.0   ;;  %vm350_vm0 = vmmov 0   ;;  %vm21_vm1 = vcmask 261120   ;;  %v351_v24 = vmov 0   ;;  %s424_s1 = inlined_call_operand.vmem [shape: f32[104,32], index: 1, kind: input, shape index: {}]   ;;  %s425_s0 = inlined_call_operand.vmem [shape: f32[8,32], index: 0, kind: input, shape index: {}]   ;;  %s426_s2 = inlined_call_operand.vmem [shape: f32[8,2], index: 2, kind: output, shape index: {}]  }
   0x1   :  { %308 = vmatprep.subr.mxu0 %v349_v0  ;;  %v15_v1 = vld [vmem:[%s424_s1 + $0x18] sm:$0xff]  ;;  %v14_v2 = vld [vmem:[%s424_s1 + $0x10] sm:$0xff]  ;;  %316 = vmatprep.mubr.msk.f32.mxu0 %vm350_vm0, %v349_v0  ;;  %v13_v4 = vld [vmem:[%s424_s1 + $0x8] sm:$0xff]  ;;  %v266_v35 = vlaneseq  ;;  %vm281_vm3 = vcmask 15360  }
   0x2   :  { %309 = vmatpush3.msra.mxu0 %v15_v1  ;;  %319 = vmatprep.subr.mxu1 %v349_v0  ;;  %v99_v3 = vld [vmem:[%s424_s1 + $0x38] sm:$0xff]  ;;  %v12_v5 = vld [vmem:[%s424_s1] sm:$0xff]  ;;  %v98_v7 = vld [vmem:[%s424_s1 + $0x30] sm:$0xff] }
   0x3   :  { %310 = vmatprep.subr.mxu0 %v349_v0  ;;  %320 = vmatpush3.msra.mxu1 %v99_v3  ;;  %v11_v6 = vld [vmem:[%s425_s0] sm:$0xff]  ;;  %v97_v8 = vld [vmem:[%s424_s1 + $0x28] sm:$0xff]  ;;  %v182_v10 = vld [vmem:[%s424_s1 + $0x58] sm:$0xff]  ;;  %v267_v36 = vand.u32 127, %v266_v35 }
   0x4   :  { %311 = vmatpush3.msra.mxu0 %v14_v2  ;;  %321 = vmatprep.subr.mxu1 %v349_v0  ;;  %v96_v9 = vld [vmem:[%s424_s1 + $0x20] sm:$0xff]  ;;  %v181_v16 = vld [vmem:[%s424_s1 + $0x50] sm:$0xff]  ;;  %v180_v17 = vld [vmem:[%s424_s1 + $0x48] sm:$0xff] }
   0x5   :  { %312 = vmatprep.subr.mxu0 %v349_v0  ;;  %327 = vmatprep.mubr.msk.f32.mxu1 %vm350_vm0, %v349_v0  ;;  %v287_v11 = vld [vmem:[%s424_s1 + $0x60] ss:$0 sm:$0xff]  ;;  %v289_v19 = vld [vmem:[%s424_s1 + $0x61] ss:$0 sm:$0xff]  ;;  %v291_v25 = vld [vmem:[%s424_s1 + $0x62] ss:$0 sm:$0xff] }
   0x6   :  { %313 = vmatpush3.msra.mxu0 %v13_v4  ;;  %322 = vmatpush3.msra.mxu1 %v98_v7  ;;  %v179_v18 = vld [vmem:[%s424_s1 + $0x40] sm:$0xff]  ;;  %vm268_vm2 = vcmp.eq.s32.totalorder %v267_v36, 0 }
   0x7   :  { %314 = vmatprep.subr.mxu0 %v349_v0  ;;  %323 = vmatprep.subr.mxu1 %v349_v0 }
   0x8   :  { %315 = vmatpush3.msra.mxu0 %v12_v5  ;;  %324 = vmatpush3.msra.mxu1 %v97_v8 }
   0x9   :  { %317 = vmatmul.mubr.msk.f32.vlgmr.msra.gmra.mxu0 %vm21_vm1, %v11_v6  ;;  %330 = vmatprep.subr.mxu0 %v349_v0 }
   0xa   :  { %338 = vmatprep.mubr.msk.f32.mxu0 %vm350_vm0, %v349_v0  ;;  %325 = vmatprep.subr.mxu1 %v349_v0 }
   0xb   :  { %326 = vmatpush3.msra.mxu1 %v96_v9  ;;  %331 = vmatpush3.msra.mxu0 %v182_v10 }
   0xc   :  { %332 = vmatprep.subr.mxu0 %v349_v0  ;;  %344 = vset.pattern.permute.xlu0 %v351_v24 }
   0xd   :  { %333 = vmatpush3.msra.mxu0 %v181_v16 }
   0xe   :  { %334 = vmatprep.subr.mxu0 %v349_v0 }
   0xf   :  { %335 = vmatpush3.msra.mxu0 %v180_v17 }
  0x10   :  { %336 = vmatprep.subr.mxu0 %v349_v0 }
  0x11   :  { %337 = vmatpush3.msra.mxu0 %v179_v18 }
  0xc9   :  { %v91_v12 = vpop.f32.mrf.mxu0 }
  0xca   :  { %v92_v13 = vadd.f32 %v287_v11, %v91_v12 }
  0xcb   :  { %v318_v14 = vpop.f32.mrf.mxu0 }
  0xcc   :  { %v95_v15 = vmax.f32 %v92_v13, 0.0 }
  0xce   :  { %328 = vmatmul.mubr.msk.f32.vlgmr.msra.gmra.mxu1 %vm21_vm1, %v95_v15 }
 0x18e   :  { %v174_v20 = vpop.f32.mrf.mxu1 }
 0x18f   :  { %v175_v21 = vadd.f32 %v289_v19, %v174_v20 }
 0x190   :  { %v329_v22 = vpop.f32.mrf.mxu1 }
 0x191   :  { %v178_v23 = vmax.f32 %v175_v21, 0.0 }
 0x193   :  { %339 = vmatmul.mubr.msk.f32.vlgmr.msra.gmra.mxu0 %vm21_vm1, %v178_v23 }
 0x253   :  { %v257_v26 = vpop.f32.mrf.mxu0 }
 0x254   :  { %v258_v27 = vadd.f32 %v291_v25, %v257_v26 }
 0x255   :  { %v340_v28 = vpop.f32.mrf.mxu0 }
 0x256   :  { %v261_v29 = vsub.f32 0.0, %v258_v27 }
 0x258   :  { %v262_v30 = vmul.f32 1.442695, %v261_v29 }
 0x25a   :  { %345 = vpow2.f32 %v262_v30 }
 0x267   :  { %v346_v31 = vpop.eup %345 }
 0x268   :  { %v264_v32 = vadd.f32 1.0, %v346_v31 }
 0x26a   :  { %347 = vrcp.f32 %v264_v32 }
 0x277   :  { %v348_v33 = vpop.eup %347 }
 0x278   :  { %272 = vperm.xlu0 %344, %v348_v33   ;;  %v269_v34 = vsub.f32 1.0, %v348_v33 }
 0x27c   :  { %277 = vperm.xlu0 %344, %v269_v34  }
 0x2f3   :  { %v273_v37 = vpop.permute.xlu0 %272 }
 0x2f7   :  { %v278_v38 = vpop.permute.xlu0 %277 }
 0x2f8   :  { %v280_v39 = vsel %vm268_vm2, %v273_v37, %v278_v38 }
 0x2f9   :  { %282 = vst.msk [vmem:[%s426_s2] sm:$0xff] %vm281_vm3, %v280_v39 }

</bundles_post_ra>
